<compile_context>
chip_gen: v7x
topology: tpu7x:2x2x1
jax: 0.10.0
libtpu: 0.0.40
codegen_flags: <defaults>
</compile_context>

<pallas_src>
import jax
import jax.numpy as jnp
from jax.experimental import pallas as pl
from jax.experimental.pallas import tpu as pltpu

F32 = jnp.float32
BF16 = jnp.bfloat16
LANES = 128


def _round_up(x, m):
    return ((x + m - 1) // m) * m


# ---------------------------------------------------------------------------
# Weight-slab packing helpers (host side)
# ---------------------------------------------------------------------------
def make_slab_layout(entries):
    """entries: [(name, (rows, cols))]. Row offsets are 16-aligned (bf16 tile)."""
    layout, off = {}, 0
    for name, (r, c) in entries:
        layout[name] = (off, r, c)
        off += _round_up(r, 16)
    return layout, off


def pack_bf16_slab(layout, total_rows, tensors):
    slab = jnp.zeros((total_rows, LANES), F32)
    for name, arr in tensors.items():
        off, r, c = layout[name]
        slab = slab.at[off:off + r, :c].set(arr.astype(F32))
    return slab.astype(BF16)


# ---------------------------------------------------------------------------
# Fused kernel
# ---------------------------------------------------------------------------
def build_kernel(wl, brow, bcol):
    """wl: name -> (row_off, rows, cols) in the bf16 slab.
       brow: name -> (row, width) in the f32 row-bias slab.
       bcol: name -> (row_off, rows) in the f32 column-bias slab."""

    def kernel(x_ref, a0_ref, a1_ref, mask_ref, w_ref, brow_ref, bcol_ref,
               pred_ref, scores_ref):
        def W(name):
            off, r, c = wl[name]
            return w_ref[off:off + r, 0:c]                     # static slice, bf16

        def BR(name):
            row, width = brow[name]
            return brow_ref[row:row + 1, 0:width]              # (1, width) f32

        def BC(name):
            off, r = bcol[name]
            return bcol_ref[off:off + r, 0:1]                  # (r, 1) f32

        def mm(a, b):
            return jnp.dot(a.astype(BF16), b.astype(BF16),
                           preferred_element_type=F32)

        relu = lambda v: jnp.maximum(v, 0.0)

        # ---- 2 GIN layers on the stacked batch (N = B*n nodes) -------------
        # eval-BN folded into weights; (1+eps_gin) folded onto the adjacency
        # diagonal, so pooled = A_l @ h in a single matmul.
        h = x_ref[...]                                         # (N, Fin) f32
        h = relu(mm(mm(a0_ref[...], h), W("g0_w1")) + BR("g0_b1"))
        h = relu(mm(h, W("g0_w2")) + BR("g0_b2"))
        h = relu(mm(mm(a1_ref[...], h), W("g1_w1")) + BR("g1_b1"))
        h = relu(mm(h, W("g1_w2")) + BR("g1_b2"))              # (N, F) f32

        # ---- graph sum-pool readout + FC head (lane-padded scores) ---------
        # TODO(synk): pvr persistence + ISAB/PMA diagram encoder stubbed as
        # zeros; with plus=True the head input is just the pooled readout.
        pooled = mm(W("gpool"), h)                             # (B, F)
        x1 = relu(mm(pooled, W("fc1_w")) + BR("fc1_b"))        # (B, 64)
        x2 = relu(mm(x1, W("fc2_w")) + BR("fc2_b"))            # (B, 32)
        scores_ref[...] = mm(x2, W("fc3_w")) + BR("fc3_b")     # (B, 128) lane-dense

        # ---- LGVR edge / metric branch, channel-major -----------------------
        # sp branch folded on host: v = h @ W_v + c_v
        v = mm(h, W("w_v")) + BR("c_v")                        # (N, F) f32
        vt = jnp.transpose(v)                                  # (F, N) tiny xpose
        # (v_i+v_j) @ w0a  ==  (w0a @ v^T) broadcast-added over pairs:
        u = mm(W("w0a"), vt)                                   # (2F, N)
        e_sum = mm(u, W("r_sum"))                              # (2F, P): u_i + u_j
        d = jnp.abs(mm(vt, W("r_diff")))                       # (F, P): |v_i - v_j|
        e = relu(e_sum + mm(W("w0b"), d) + BC("b0")) * mask_ref[...]
        # masked row+col sums (incl. self) and (eps1-1)*e in one indicator
        # matmul:  M' = Ri^T Ri + Rj^T Rj + (eps1-1) I   (host-built constant)
        e = mm(e, W("m_agg"))                                  # (2F, P)
        z = relu(mm(W("w1m"), e) + BC("b1m"))                  # (F, P)
        logit = mm(W("w2m"), z) + BC("b2m")                    # (1, P)
        pred_ref[...] = jax.nn.sigmoid(logit)                  # (1, P) lane-dense

    return kernel


def gin_lgvr_forward(x_nodes, a0, a1, adj_mask, wslab, bias_rows, bias_cols,
                     dims, wl, brow, bcol):
    B, n, num_classes = dims["B"], dims["n"], dims["num_classes"]
    P = B * n * n
    kernel = build_kernel(wl, brow, bcol)
    vmem_spec = lambda: pl.BlockSpec(memory_space=pltpu.MemorySpace.VMEM)

    pred, scores = pl.pallas_call(
        kernel,
        out_shape=(jax.ShapeDtypeStruct((1, P), F32),
                   jax.ShapeDtypeStruct((B, LANES), F32)),
        in_specs=[vmem_spec() for _ in range(7)],
        out_specs=(vmem_spec(), vmem_spec()),
    )(x_nodes, a0, a1, adj_mask, wslab, bias_rows, bias_cols)

    return scores[:, :num_classes], pred.reshape(B, n, n)


# ---------------------------------------------------------------------------
# Parameter construction (plain-JAX host glue)
# ---------------------------------------------------------------------------
def bn_fold(key, dim):
    """Deterministic eval-mode BatchNorm1d -> per-feature (scale, shift)."""
    k1, k2, k3, k4 = jax.random.split(key, 4)
    gamma = 1.0 + 0.1 * jax.random.normal(k1, (dim,), F32)
    beta = 0.1 * jax.random.normal(k2, (dim,), F32)
    mean = 0.1 * jax.random.normal(k3, (dim,), F32)
    var = 0.5 + jnp.abs(jax.random.normal(k4, (dim,), F32))
    scale = gamma / jnp.sqrt(var + 1e-5)
    return scale[None, :], (beta - mean * scale)[None, :]


def dense(key, fan_in, fan_out):
    kw, kb = jax.random.split(key)
    return (0.2 * jax.random.normal(kw, (fan_in, fan_out), F32),
            0.05 * jax.random.normal(kb, (1, fan_out), F32))


def main():
    key = jax.random.PRNGKey(0)

    # ---- config (small, consistent with the module) ------------------------
    B, n = 2, 8                  # graphs per batch, nodes per graph
    fin = 4                      # config.node_labels
    F = 16                       # block_features[-1] (= hidden)
    num_classes = 3
    N, P, C2 = B * n, B * n * n, 2 * F          # 16, 128, 32
    dims = dict(B=B, n=n, fin=fin, F=F, num_classes=num_classes)

    keys = iter(jax.random.split(key, 40))

    # ---- inputs -------------------------------------------------------------
    X = jax.random.normal(next(keys), (B, n, fin), F32)
    x_nodes = X.reshape(N, fin)                               # stacked node feats

    adj_raw = jax.random.uniform(next(keys), (B, n, n)) < 0.4
    adj = jnp.triu(adj_raw.astype(F32), 1)
    adj = adj + jnp.transpose(adj, (0, 2, 1))                 # symmetric, no self loops

    eps_gin = jnp.zeros((2,), F32)                            # nn.Parameter init (zeros)
    extra_eps = jnp.zeros((3,), F32)

    # block-diagonal Adj_block with (1 + eps_gin[layer]) folded onto the diagonal
    a_block = jnp.zeros((N, N), F32)
    for g in range(B):
        a_block = a_block.at[g * n:(g + 1) * n, g * n:(g + 1) * n].set(adj[g])
    eye_n = jnp.eye(N, dtype=F32)
    a0 = (a_block + (1.0 + eps_gin[0]) * eye_n).astype(BF16)
    a1 = (a_block + (1.0 + eps_gin[1]) * eye_n).astype(BF16)

    adj_mask = adj.reshape(1, P)                              # f32 edge mask (1, 128)

    # ---- GIN params (MLP depth 2), eval BN folded into weights -------------
    def gin_params(din):
        w1, b1 = dense(next(keys), din, F)
        s1, t1 = bn_fold(next(keys), F)                       # BN inside the MLP
        w2, b2 = dense(next(keys), F, F)
        so, to = bn_fold(next(keys), F)                       # outer batch_norms[layer]
        return w1 * s1, b1 * s1 + t1, w2 * so, b2 * so + to

    g0_w1, g0_b1, g0_w2, g0_b2 = gin_params(fin)
    g1_w1, g1_b1, g1_w2, g1_b2 = gin_params(F)

    # ---- LGVR edge/metric params --------------------------------------------
    wsp = 0.2 * jax.random.normal(next(keys), (F, 1), F32)    # Conv1d F->1, k=1
    bsp = 0.05 * jax.random.normal(next(keys), (), F32)
    w0 = 0.2 * jax.random.normal(next(keys), (C2, C2), F32)   # Conv2d 2F->2F (out, in)
    b0 = 0.05 * jax.random.normal(next(keys), (C2,), F32)
    w1m = 0.2 * jax.random.normal(next(keys), (F, C2), F32)   # Conv2d 2F->F
    b1m = 0.05 * jax.random.normal(next(keys), (F,), F32)
    w2m = 0.2 * jax.random.normal(next(keys), (1, F), F32)    # Conv2d F->1
    b2m = 0.05 * jax.random.normal(next(keys), (), F32)

    # fold sp branch:  v = h + (1+eps0)*(h@wsp + bsp)  ==  h @ W_v + c_v
    w_v = jnp.eye(F, dtype=F32) + (1.0 + extra_eps[0]) * (wsp @ jnp.ones((1, F), F32))
    c_v = ((1.0 + extra_eps[0]) * bsp) * jnp.ones((1, F), F32)

    # ---- indicator matrices (graph-structure constants, exact in bf16) ------
    col = jnp.arange(P)
    g_of = col // (n * n)
    i_of = (col % (n * n)) // n
    j_of = col % n
    r_i = jax.nn.one_hot(g_of * n + i_of, N, dtype=F32).T     # (N, P)
    r_j = jax.nn.one_hot(g_of * n + j_of, N, dtype=F32).T     # (N, P)
    r_sum = r_i + r_j                                         # v_i + v_j broadcast
    r_diff = r_i - r_j                                        # v_i - v_j broadcast
    m_agg = (r_i.T @ r_i + r_j.T @ r_j                        # row+col sums
             + (extra_eps[1] - 1.0) * jnp.eye(P, dtype=F32))  # + (1+eps1-2)*e
    gpool = jnp.kron(jnp.eye(B, dtype=F32), jnp.ones((1, n), F32))   # (B, N) sum pool

    # ---- FC head (last layer padded to 128 lanes, sliced outside) -----------
    fc1_w, fc1_b = dense(next(keys), F, 64)
    fc2_w, fc2_b = dense(next(keys), 64, 32)
    fc3_w, fc3_b = dense(next(keys), 32, num_classes)
    fc3_w_pad = jnp.zeros((32, LANES), F32).at[:, :num_classes].set(fc3_w)
    fc3_b_pad = jnp.zeros((1, LANES), F32).at[:, :num_classes].set(fc3_b)

    # ---- consolidate params: one bf16 slab + two f32 bias slabs -------------
    entries = [
        ("g0_w1", (fin, F)), ("g0_w2", (F, F)),
        ("g1_w1", (F, F)),   ("g1_w2", (F, F)),
        ("w_v",   (F, F)),
        ("w0a",   (C2, F)),  ("w0b", (C2, F)),
        ("w1m",   (F, C2)),  ("w2m", (1, F)),
        ("r_sum", (N, P)),   ("r_diff", (N, P)),
        ("m_agg", (P, P)),
        ("gpool", (B, N)),
        ("fc1_w", (F, 64)),  ("fc2_w", (64, 32)), ("fc3_w", (32, LANES)),
    ]
    wl, slab_rows = make_slab_layout(entries)
    wslab = pack_bf16_slab(wl, slab_rows, {
        "g0_w1": g0_w1, "g0_w2": g0_w2, "g1_w1": g1_w1, "g1_w2": g1_w2,
        "w_v": w_v,
        "w0a": w0[:, :F], "w0b": w0[:, F:],        # split conv: acts on (v_i+v_j) / |v_i-v_j|
        "w1m": w1m, "w2m": w2m,
        "r_sum": r_sum, "r_diff": r_diff, "m_agg": m_agg,
        "gpool": gpool,
        "fc1_w": fc1_w, "fc2_w": fc2_w, "fc3_w": fc3_w_pad,
    })

    brow = {"g0_b1": (0, F), "g0_b2": (1, F), "g1_b1": (2, F), "g1_b2": (3, F),
            "c_v": (4, F), "fc1_b": (5, 64), "fc2_b": (6, 32), "fc3_b": (7, LANES)}
    bias_rows = jnp.zeros((8, LANES), F32)
    for name, arr in [("g0_b1", g0_b1), ("g0_b2", g0_b2), ("g1_b1", g1_b1),
                      ("g1_b2", g1_b2), ("c_v", c_v), ("fc1_b", fc1_b),
                      ("fc2_b", fc2_b), ("fc3_b", fc3_b_pad)]:
        row, width = brow[name]
        bias_rows = bias_rows.at[row, :width].set(arr.reshape(-1))

    bcol = {"b0": (0, C2), "b1m": (C2, F), "b2m": (C2 + F, 1)}
    bias_cols = jnp.zeros((_round_up(C2 + F + 1, 8), 1), F32)
    bias_cols = bias_cols.at[0:C2, 0].set(b0)
    bias_cols = bias_cols.at[C2:C2 + F, 0].set(b1m)
    bias_cols = bias_cols.at[C2 + F, 0].set(b2m)

    # ---- forward: a single fused Pallas call ---------------------------------
    scores, total_batch_pred_adjs = gin_lgvr_forward(
        x_nodes, a0, a1, adj_mask, wslab, bias_rows, bias_cols,
        dims, wl, brow, bcol)

    scores = jax.block_until_ready(scores)
    total_batch_pred_adjs = jax.block_until_ready(total_batch_pred_adjs)

    assert scores.shape == (B, num_classes)
    assert total_batch_pred_adjs.shape == (B, n, n)
    assert bool(jnp.all(jnp.isfinite(scores)))
    assert bool(jnp.all(jnp.isfinite(total_batch_pred_adjs)))
    print("KERNEL_OK")


if __name__ == "__main__":
    main()
</pallas_src>

<mosaic_0001>
module attributes {stable_mosaic.version = 11 : i64} {
  func.func @kernel(%arg0: memref<16x4xf32, #tpu.memory_space<vmem>>, %arg1: memref<16x16xbf16, #tpu.memory_space<vmem>>, %arg2: memref<16x16xbf16, #tpu.memory_space<vmem>>, %arg3: memref<1x128xf32, #tpu.memory_space<vmem>>, %arg4: memref<464x128xbf16, #tpu.memory_space<vmem>>, %arg5: memref<8x128xf32, #tpu.memory_space<vmem>>, %arg6: memref<56x1xf32, #tpu.memory_space<vmem>>, %arg7: memref<1x128xf32, #tpu.memory_space<vmem>>, %arg8: memref<2x128xf32, #tpu.memory_space<vmem>>) attributes {dimension_semantics = [], scalar_prefetch = 0 : i64, scratch_operands = 0 : i64, tpu.core_type = #tpu.core_type<tc>} {
    %c0 = arith.constant 0 : index
    %c0_0 = arith.constant 0 : index
    %0 = vector.load %arg0[%c0, %c0_0] : memref<16x4xf32, #tpu.memory_space<vmem>>, vector<16x4xf32>
    %c0_1 = arith.constant 0 : index
    %c0_2 = arith.constant 0 : index
    %1 = vector.load %arg1[%c0_1, %c0_2] : memref<16x16xbf16, #tpu.memory_space<vmem>>, vector<16x16xbf16>
    %2 = arith.truncf %0 : vector<16x4xf32> to vector<16x4xbf16>
    %cst = arith.constant dense<0.000000e+00> : vector<16x4xf32>
    %3 = tpu.matmul %1, %2, %cst {dimension_numbers = #tpu.dot_dimension_numbers<[1], [0], [0], [1], [0, 0, 1, 1], [], []>} : vector<16x16xbf16>, vector<16x4xbf16>, vector<16x4xf32> -> vector<16x4xf32>
    %c0_3 = arith.constant 0 : index
    %c0_4 = arith.constant 0 : index
    %4 = vector.load %arg4[%c0_3, %c0_4] : memref<464x128xbf16, #tpu.memory_space<vmem>>, vector<4x16xbf16>
    %5 = arith.truncf %3 : vector<16x4xf32> to vector<16x4xbf16>
    %cst_5 = arith.constant dense<0.000000e+00> : vector<16x16xf32>
    %6 = tpu.matmul %5, %4, %cst_5 {dimension_numbers = #tpu.dot_dimension_numbers<[1], [0], [0], [1], [0, 0, 1, 1], [], []>} : vector<16x4xbf16>, vector<4x16xbf16>, vector<16x16xf32> -> vector<16x16xf32>
    %c0_6 = arith.constant 0 : index
    %c0_7 = arith.constant 0 : index
    %7 = vector.load %arg5[%c0_6, %c0_7] : memref<8x128xf32, #tpu.memory_space<vmem>>, vector<1x16xf32>
    %8 = vector.broadcast %7 : vector<1x16xf32> to vector<16x16xf32>
    %9 = arith.addf %6, %8 : vector<16x16xf32>
    %cst_8 = arith.constant 0.000000e+00 : f32
    %10 = vector.broadcast %cst_8 : f32 to vector<16x16xf32>
    %11 = arith.maximumf %9, %10 : vector<16x16xf32>
    %c16 = arith.constant 16 : index
    %c0_9 = arith.constant 0 : index
    %12 = vector.load %arg4[%c16, %c0_9] : memref<464x128xbf16, #tpu.memory_space<vmem>>, vector<16x16xbf16>
    %13 = arith.truncf %11 : vector<16x16xf32> to vector<16x16xbf16>
    %cst_10 = arith.constant dense<0.000000e+00> : vector<16x16xf32>
    %14 = tpu.matmul %13, %12, %cst_10 {dimension_numbers = #tpu.dot_dimension_numbers<[1], [0], [0], [1], [0, 0, 1, 1], [], []>} : vector<16x16xbf16>, vector<16x16xbf16>, vector<16x16xf32> -> vector<16x16xf32>
    %c1 = arith.constant 1 : index
    %c0_11 = arith.constant 0 : index
    %15 = vector.load %arg5[%c1, %c0_11] : memref<8x128xf32, #tpu.memory_space<vmem>>, vector<1x16xf32>
    %16 = vector.broadcast %15 : vector<1x16xf32> to vector<16x16xf32>
    %17 = arith.addf %14, %16 : vector<16x16xf32>
    %cst_12 = arith.constant 0.000000e+00 : f32
    %18 = vector.broadcast %cst_12 : f32 to vector<16x16xf32>
    %19 = arith.maximumf %17, %18 : vector<16x16xf32>
    %c0_13 = arith.constant 0 : index
    %c0_14 = arith.constant 0 : index
    %20 = vector.load %arg2[%c0_13, %c0_14] : memref<16x16xbf16, #tpu.memory_space<vmem>>, vector<16x16xbf16>
    %21 = arith.truncf %19 : vector<16x16xf32> to vector<16x16xbf16>
    %cst_15 = arith.constant dense<0.000000e+00> : vector<16x16xf32>
    %22 = tpu.matmul %20, %21, %cst_15 {dimension_numbers = #tpu.dot_dimension_numbers<[1], [0], [0], [1], [0, 0, 1, 1], [], []>} : vector<16x16xbf16>, vector<16x16xbf16>, vector<16x16xf32> -> vector<16x16xf32>
    %c32 = arith.constant 32 : index
    %c0_16 = arith.constant 0 : index
    %23 = vector.load %arg4[%c32, %c0_16] : memref<464x128xbf16, #tpu.memory_space<vmem>>, vector<16x16xbf16>
    %24 = arith.truncf %22 : vector<16x16xf32> to vector<16x16xbf16>
    %cst_17 = arith.constant dense<0.000000e+00> : vector<16x16xf32>
    %25 = tpu.matmul %24, %23, %cst_17 {dimension_numbers = #tpu.dot_dimension_numbers<[1], [0], [0], [1], [0, 0, 1, 1], [], []>} : vector<16x16xbf16>, vector<16x16xbf16>, vector<16x16xf32> -> vector<16x16xf32>
    %c2 = arith.constant 2 : index
    %c0_18 = arith.constant 0 : index
    %26 = vector.load %arg5[%c2, %c0_18] : memref<8x128xf32, #tpu.memory_space<vmem>>, vector<1x16xf32>
    %27 = vector.broadcast %26 : vector<1x16xf32> to vector<16x16xf32>
    %28 = arith.addf %25, %27 : vector<16x16xf32>
    %cst_19 = arith.constant 0.000000e+00 : f32
    %29 = vector.broadcast %cst_19 : f32 to vector<16x16xf32>
    %30 = arith.maximumf %28, %29 : vector<16x16xf32>
    %c48 = arith.constant 48 : index
    %c0_20 = arith.constant 0 : index
    %31 = vector.load %arg4[%c48, %c0_20] : memref<464x128xbf16, #tpu.memory_space<vmem>>, vector<16x16xbf16>
    %32 = arith.truncf %30 : vector<16x16xf32> to vector<16x16xbf16>
    %cst_21 = arith.constant dense<0.000000e+00> : vector<16x16xf32>
    %33 = tpu.matmul %32, %31, %cst_21 {dimension_numbers = #tpu.dot_dimension_numbers<[1], [0], [0], [1], [0, 0, 1, 1], [], []>} : vector<16x16xbf16>, vector<16x16xbf16>, vector<16x16xf32> -> vector<16x16xf32>
    %c3 = arith.constant 3 : index
    %c0_22 = arith.constant 0 : index
    %34 = vector.load %arg5[%c3, %c0_22] : memref<8x128xf32, #tpu.memory_space<vmem>>, vector<1x16xf32>
    %35 = vector.broadcast %34 : vector<1x16xf32> to vector<16x16xf32>
    %36 = arith.addf %33, %35 : vector<16x16xf32>
    %cst_23 = arith.constant 0.000000e+00 : f32
    %37 = vector.broadcast %cst_23 : f32 to vector<16x16xf32>
    %38 = arith.maximumf %36, %37 : vector<16x16xf32>
    %c336 = arith.constant 336 : index
    %c0_24 = arith.constant 0 : index
    %39 = vector.load %arg4[%c336, %c0_24] : memref<464x128xbf16, #tpu.memory_space<vmem>>, vector<2x16xbf16>
    %40 = arith.truncf %38 : vector<16x16xf32> to vector<16x16xbf16>
    %cst_25 = arith.constant dense<0.000000e+00> : vector<2x16xf32>
    %41 = tpu.matmul %39, %40, %cst_25 {dimension_numbers = #tpu.dot_dimension_numbers<[1], [0], [0], [1], [0, 0, 1, 1], [], []>} : vector<2x16xbf16>, vector<16x16xbf16>, vector<2x16xf32> -> vector<2x16xf32>
    %c352 = arith.constant 352 : index
    %c0_26 = arith.constant 0 : index
    %42 = vector.load %arg4[%c352, %c0_26] : memref<464x128xbf16, #tpu.memory_space<vmem>>, vector<16x64xbf16>
    %43 = arith.truncf %41 : vector<2x16xf32> to vector<2x16xbf16>
    %cst_27 = arith.constant dense<0.000000e+00> : vector<2x64xf32>
    %44 = tpu.matmul %43, %42, %cst_27 {dimension_numbers = #tpu.dot_dimension_numbers<[1], [0], [0], [1], [0, 0, 1, 1], [], []>} : vector<2x16xbf16>, vector<16x64xbf16>, vector<2x64xf32> -> vector<2x64xf32>
    %c5 = arith.constant 5 : index
    %c0_28 = arith.constant 0 : index
    %45 = vector.load %arg5[%c5, %c0_28] : memref<8x128xf32, #tpu.memory_space<vmem>>, vector<1x64xf32>
    %46 = vector.broadcast %45 : vector<1x64xf32> to vector<2x64xf32>
    %47 = arith.addf %44, %46 : vector<2x64xf32>
    %cst_29 = arith.constant 0.000000e+00 : f32
    %48 = vector.broadcast %cst_29 : f32 to vector<2x64xf32>
    %49 = arith.maximumf %47, %48 : vector<2x64xf32>
    %c368 = arith.constant 368 : index
    %c0_30 = arith.constant 0 : index
    %50 = vector.load %arg4[%c368, %c0_30] : memref<464x128xbf16, #tpu.memory_space<vmem>>, vector<64x32xbf16>
    %51 = arith.truncf %49 : vector<2x64xf32> to vector<2x64xbf16>
    %cst_31 = arith.constant dense<0.000000e+00> : vector<2x32xf32>
    %52 = tpu.matmul %51, %50, %cst_31 {dimension_numbers = #tpu.dot_dimension_numbers<[1], [0], [0], [1], [0, 0, 1, 1], [], []>} : vector<2x64xbf16>, vector<64x32xbf16>, vector<2x32xf32> -> vector<2x32xf32>
    %c6 = arith.constant 6 : index
    %c0_32 = arith.constant 0 : index
    %53 = vector.load %arg5[%c6, %c0_32] : memref<8x128xf32, #tpu.memory_space<vmem>>, vector<1x32xf32>
    %54 = vector.broadcast %53 : vector<1x32xf32> to vector<2x32xf32>
    %55 = arith.addf %52, %54 : vector<2x32xf32>
    %cst_33 = arith.constant 0.000000e+00 : f32
    %56 = vector.broadcast %cst_33 : f32 to vector<2x32xf32>
    %57 = arith.maximumf %55, %56 : vector<2x32xf32>
    %c432 = arith.constant 432 : index
    %c0_34 = arith.constant 0 : index
    %58 = vector.load %arg4[%c432, %c0_34] : memref<464x128xbf16, #tpu.memory_space<vmem>>, vector<32x128xbf16>
    %59 = arith.truncf %57 : vector<2x32xf32> to vector<2x32xbf16>
    %cst_35 = arith.constant dense<0.000000e+00> : vector<2x128xf32>
    %60 = tpu.matmul %59, %58, %cst_35 {dimension_numbers = #tpu.dot_dimension_numbers<[1], [0], [0], [1], [0, 0, 1, 1], [], []>} : vector<2x32xbf16>, vector<32x128xbf16>, vector<2x128xf32> -> vector<2x128xf32>
    %c7 = arith.constant 7 : index
    %c0_36 = arith.constant 0 : index
    %61 = vector.load %arg5[%c7, %c0_36] : memref<8x128xf32, #tpu.memory_space<vmem>>, vector<1x128xf32>
    %62 = vector.broadcast %61 : vector<1x128xf32> to vector<2x128xf32>
    %63 = arith.addf %60, %62 : vector<2x128xf32>
    %c0_37 = arith.constant 0 : index
    %c0_38 = arith.constant 0 : index
    %64 = vector.load %arg8[%c0_37, %c0_38] : memref<2x128xf32, #tpu.memory_space<vmem>>, vector<2x128xf32>
    tpu.vector_store %arg8[%c0_37, %c0_38], %63 {strides = array<i32>} : memref<2x128xf32, #tpu.memory_space<vmem>>, vector<2x128xf32>,
    %c64 = arith.constant 64 : index
    %c0_39 = arith.constant 0 : index
    %65 = vector.load %arg4[%c64, %c0_39] : memref<464x128xbf16, #tpu.memory_space<vmem>>, vector<16x16xbf16>
    %66 = arith.truncf %38 : vector<16x16xf32> to vector<16x16xbf16>
    %cst_40 = arith.constant dense<0.000000e+00> : vector<16x16xf32>
    %67 = tpu.matmul %66, %65, %cst_40 {dimension_numbers = #tpu.dot_dimension_numbers<[1], [0], [0], [1], [0, 0, 1, 1], [], []>} : vector<16x16xbf16>, vector<16x16xbf16>, vector<16x16xf32> -> vector<16x16xf32>
    %c4 = arith.constant 4 : index
    %c0_41 = arith.constant 0 : index
    %68 = vector.load %arg5[%c4, %c0_41] : memref<8x128xf32, #tpu.memory_space<vmem>>, vector<1x16xf32>
    %69 = vector.broadcast %68 : vector<1x16xf32> to vector<16x16xf32>
    %70 = arith.addf %67, %69 : vector<16x16xf32>
    %71 = tpu.transpose %70, [1, 0] : vector<16x16xf32> -> vector<16x16xf32>
    %c80 = arith.constant 80 : index
    %c0_42 = arith.constant 0 : index
    %72 = vector.load %arg4[%c80, %c0_42] : memref<464x128xbf16, #tpu.memory_space<vmem>>, vector<32x16xbf16>
    %73 = arith.truncf %71 : vector<16x16xf32> to vector<16x16xbf16>
    %cst_43 = arith.constant dense<0.000000e+00> : vector<32x16xf32>
    %74 = tpu.matmul %72, %73, %cst_43 {dimension_numbers = #tpu.dot_dimension_numbers<[1], [0], [0], [1], [0, 0, 1, 1], [], []>} : vector<32x16xbf16>, vector<16x16xbf16>, vector<32x16xf32> -> vector<32x16xf32>
    %c176 = arith.constant 176 : index
    %c0_44 = arith.constant 0 : index
    %75 = vector.load %arg4[%c176, %c0_44] : memref<464x128xbf16, #tpu.memory_space<vmem>>, vector<16x128xbf16>
    %76 = arith.truncf %74 : vector<32x16xf32> to vector<32x16xbf16>
    %cst_45 = arith.constant dense<0.000000e+00> : vector<32x128xf32>
    %77 = tpu.matmul %76, %75, %cst_45 {dimension_numbers = #tpu.dot_dimension_numbers<[1], [0], [0], [1], [0, 0, 1, 1], [], []>} : vector<32x16xbf16>, vector<16x128xbf16>, vector<32x128xf32> -> vector<32x128xf32>
    %c192 = arith.constant 192 : index
    %c0_46 = arith.constant 0 : index
    %78 = vector.load %arg4[%c192, %c0_46] : memref<464x128xbf16, #tpu.memory_space<vmem>>, vector<16x128xbf16>
    %79 = arith.truncf %71 : vector<16x16xf32> to vector<16x16xbf16>
    %cst_47 = arith.constant dense<0.000000e+00> : vector<16x128xf32>
    %80 = tpu.matmul %79, %78, %cst_47 {dimension_numbers = #tpu.dot_dimension_numbers<[1], [0], [0], [1], [0, 0, 1, 1], [], []>} : vector<16x16xbf16>, vector<16x128xbf16>, vector<16x128xf32> -> vector<16x128xf32>
    %81 = math.absf %80 : vector<16x128xf32>
    %c112 = arith.constant 112 : index
    %c0_48 = arith.constant 0 : index
    %82 = vector.load %arg4[%c112, %c0_48] : memref<464x128xbf16, #tpu.memory_space<vmem>>, vector<32x16xbf16>
    %83 = arith.truncf %81 : vector<16x128xf32> to vector<16x128xbf16>
    %cst_49 = arith.constant dense<0.000000e+00> : vector<32x128xf32>
    %84 = tpu.matmul %82, %83, %cst_49 {dimension_numbers = #tpu.dot_dimension_numbers<[1], [0], [0], [1], [0, 0, 1, 1], [], []>} : vector<32x16xbf16>, vector<16x128xbf16>, vector<32x128xf32> -> vector<32x128xf32>
    %85 = arith.addf %77, %84 : vector<32x128xf32>
    %c0_50 = arith.constant 0 : index
    %c0_51 = arith.constant 0 : index
    %86 = vector.load %arg6[%c0_50, %c0_51] : memref<56x1xf32, #tpu.memory_space<vmem>>, vector<32x1xf32>
    %87 = vector.broadcast %86 : vector<32x1xf32> to vector<32x128xf32>
    %88 = arith.addf %85, %87 : vector<32x128xf32>
    %cst_52 = arith.constant 0.000000e+00 : f32
    %89 = vector.broadcast %cst_52 : f32 to vector<32x128xf32>
    %90 = arith.maximumf %88, %89 : vector<32x128xf32>
    %c0_53 = arith.constant 0 : index
    %c0_54 = arith.constant 0 : index
    %91 = vector.load %arg3[%c0_53, %c0_54] : memref<1x128xf32, #tpu.memory_space<vmem>>, vector<1x128xf32>
    %92 = vector.broadcast %91 : vector<1x128xf32> to vector<32x128xf32>
    %93 = arith.mulf %90, %92 : vector<32x128xf32>
    %c208 = arith.constant 208 : index
    %c0_55 = arith.constant 0 : index
    %94 = vector.load %arg4[%c208, %c0_55] : memref<464x128xbf16, #tpu.memory_space<vmem>>, vector<128x128xbf16>
    %95 = arith.truncf %93 : vector<32x128xf32> to vector<32x128xbf16>
    %cst_56 = arith.constant dense<0.000000e+00> : vector<32x128xf32>
    %96 = tpu.matmul %95, %94, %cst_56 {dimension_numbers = #tpu.dot_dimension_numbers<[1], [0], [0], [1], [0, 0, 1, 1], [], []>} : vector<32x128xbf16>, vector<128x128xbf16>, vector<32x128xf32> -> vector<32x128xf32>
    %c144 = arith.constant 144 : index
    %c0_57 = arith.constant 0 : index
    %97 = vector.load %arg4[%c144, %c0_57] : memref<464x128xbf16, #tpu.memory_space<vmem>>, vector<16x32xbf16>
    %98 = arith.truncf %96 : vector<32x128xf32> to vector<32x128xbf16>
    %cst_58 = arith.constant dense<0.000000e+00> : vector<16x128xf32>
    %99 = tpu.matmul %97, %98, %cst_58 {dimension_numbers = #tpu.dot_dimension_numbers<[1], [0], [0], [1], [0, 0, 1, 1], [], []>} : vector<16x32xbf16>, vector<32x128xbf16>, vector<16x128xf32> -> vector<16x128xf32>
    %c32_59 = arith.constant 32 : index
    %c0_60 = arith.constant 0 : index
    %100 = vector.load %arg6[%c32_59, %c0_60] : memref<56x1xf32, #tpu.memory_space<vmem>>, vector<16x1xf32>
    %101 = vector.broadcast %100 : vector<16x1xf32> to vector<16x128xf32>
    %102 = arith.addf %99, %101 : vector<16x128xf32>
    %cst_61 = arith.constant 0.000000e+00 : f32
    %103 = vector.broadcast %cst_61 : f32 to vector<16x128xf32>
    %104 = arith.maximumf %102, %103 : vector<16x128xf32>
    %c160 = arith.constant 160 : index
    %c0_62 = arith.constant 0 : index
    %105 = vector.load %arg4[%c160, %c0_62] : memref<464x128xbf16, #tpu.memory_space<vmem>>, vector<1x16xbf16>
    %106 = arith.truncf %104 : vector<16x128xf32> to vector<16x128xbf16>
    %cst_63 = arith.constant dense<0.000000e+00> : vector<1x128xf32>
    %107 = tpu.matmul %105, %106, %cst_63 {dimension_numbers = #tpu.dot_dimension_numbers<[1], [0], [0], [1], [0, 0, 1, 1], [], []>} : vector<1x16xbf16>, vector<16x128xbf16>, vector<1x128xf32> -> vector<1x128xf32>
    %c48_64 = arith.constant 48 : index
    %c0_65 = arith.constant 0 : index
    %108 = vector.load %arg6[%c48_64, %c0_65] : memref<56x1xf32, #tpu.memory_space<vmem>>, vector<1x1xf32>
    %109 = vector.broadcast %108 : vector<1x1xf32> to vector<1x128xf32>
    %110 = arith.addf %107, %109 : vector<1x128xf32>
    %111 = arith.negf %110 : vector<1x128xf32>
    %112 = math.exp %111 : vector<1x128xf32>
    %cst_66 = arith.constant 1.000000e+00 : f32
    %113 = vector.broadcast %cst_66 : f32 to vector<1x128xf32>
    %114 = arith.addf %113, %112 : vector<1x128xf32>
    %115 = arith.divf %113, %114 : vector<1x128xf32>
    %c0_67 = arith.constant 0 : index
    %c0_68 = arith.constant 0 : index
    %116 = vector.load %arg7[%c0_67, %c0_68] : memref<1x128xf32, #tpu.memory_space<vmem>>, vector<1x128xf32>
    tpu.vector_store %arg7[%c0_67, %c0_68], %115 {strides = array<i32>} : memref<1x128xf32, #tpu.memory_space<vmem>>, vector<1x128xf32>,
    return
  }
}

</mosaic_0001>

<bundles_post_ra>
// kernel: tpu_custom_call.1
= control target key start
LH: loop header
LB: loop body
LE: loop exit
PB: predicated region body
PF: predicated region fallthrough
CT: control target
= control target key end

     0   :  { %14 = vsyncpa [#allocation3], 0  ;;  %s1877_s0 = inlined_call_operand.vmem [shape: f32[16,4], index: 0, kind: input, shape index: {}]   ;;  %s1878_s1 = inlined_call_operand.vmem [shape: bf16[16,16], index: 1, kind: input, shape index: {}]   ;;  %s1879_s2 = inlined_call_operand.vmem [shape: bf16[16,16], index: 2, kind: input, shape index: {}]   ;;  %s1880_s3 = inlined_call_operand.vmem [shape: f32[1,128], index: 3, kind: input, shape index: {}]   ;;  %s1881_s4 = inlined_call_operand.hbm [shape: bf16[464,128], index: 4, kind: input, shape index: {}]   ;;  %s1882_s5 = inlined_call_operand.vmem [shape: f32[8,128], index: 5, kind: input, shape index: {}]   ;;  %s1883_s6 = inlined_call_operand.vmem [shape: f32[56,1], index: 6, kind: input, shape index: {}]   ;;  %s1884_s7 = inlined_call_operand.hbm [shape: f32[1,128], index: 7, kind: output, shape index: {0}]   ;;  %s1885_s8 = inlined_call_operand.hbm [shape: f32[2,128], index: 8, kind: output, shape index: {1}]  }
   0x1   :  { %15 = vsyncpa [#allocation4], 0 }
   0x2   :  { %16 = vsyncpa [#allocation7], 0  ;;  %s1663_s27 = smov [#allocation2]   ;;  %s1591_s9 = scalar_lea.hbm %s1881_s4, 3712 }
   0x3   :  { %s30_s28 = sshll.u32 %s1663_s27, 4  ;;  %p1592_p0 = scmp.ne.s32.totalorder %s1881_s4, %s1591_s9  ;;  %s31_s28 = int_to_ptr.vmem [resolvable:$true] %s30_s28 }
   0x4   :  { %p1595_p1 = scmp.lt.u32.totalorder %s1591_s9, %s1881_s4 }
   0x6   :  { %p1597_p2 = pnand %p1595_p1, %p1592_p0 }
   0x8   :  { %1600 = shalt.err (!%p1597_p2)
}
   0x9   :  { %s1601_s14 = scalar_lea.vmem %s31_s28, 3712  ;;  %p1606_p4 = scmp.lt.s32.totalorder %s31_s28, %s31_s28 }
   0xa   :  { %p1602_p3 = scmp.ne.s32.totalorder %s31_s28, %s1601_s14  ;;  %p1607_p5 = scmp.lt.s32.totalorder %s1601_s14, %s1601_s14 }
   0xc   :  { %p1608_p6 = por %p1607_p5, %p1606_p4 }
   0xe   :  { %p1609_p7 = pnand %p1608_p6, %p1602_p3 }
  0x10   :  { %1612 = shalt.err (!%p1609_p7)
}
  0x11   :  { %s1664_s15 = smov 64   ;;  %s1665_s16 = smov 4  }
  0x12   :  { %36 = dma.hbm_to_vmem [thread:$0]  %s1881_s4, 3712, %s31_s28, [#allocation3], %s1664_s15, %s1664_s15, %s1665_s16  }
  0x13   :  { %1657 = dma.done.wait [#allocation3], 3712  }
  0x14   :  { %1658 = vsyncadd [#allocation3], 4294963584  ;;  %v1666_v0 = vmov 0.0   ;;  %vm1667_vm0 = vmmov 0   ;;  %v45_v1 = vld [vmem:[%s1877_s0] sm:$0xff]  ;;  %v46_v2 = vld [vmem:[%s1877_s0 + $0x8] sm:$0xff] }
  0x15   :  { %1413 = vmatprep.subr.bf16.mxu0 %v1666_v0  ;;  %1415 = vmatprep.mubr.msk.bf16.mxu0 %vm1667_vm0, %v1666_v0  ;;  %v49_v3 = vpack.c.bf16 %v46_v2, %v45_v1  ;;  %v1559_v4 = vld [vmem:[%s1878_s1] sm:$0xff]   ;;  %vm55_vm1 = vcmask 130048   ;;  %v100_v5 = vld [vmem:[#allocation2] sm:$0x3]  ;;  %vm111_vm2 = vcmask 1041408   ;;  %vm107_vm3 = vcmask 31744  }
  0x16   :  { %1419 = vmatprep.subr.bf16.mxu1 %v1666_v0  ;;  %1421 = vmatprep.mubr.msk.bf16.mxu1 %vm1667_vm0, %v1666_v0  ;;  %v113_v6 = vsel %vm111_vm2, %v100_v5, 0  ;;  %v1560_v12 = vld [vmem:[#allocation2 + $0x8] sm:$0xff]   ;;  %v1305_v13 = vld [vmem:[%s1882_s5] ss:$0 sm:$0xff]  ;;  %v1307_v23 = vld [vmem:[%s1882_s5 + $0x1] ss:$0 sm:$0xff] }
  0x17   :  { %1414 = vmatpush3.bf16.msra.mxu0 %v49_v3  ;;  %1420 = vmatpush3.bf16.msra.mxu1 %v113_v6  ;;  %v1561_v33 = vld [vmem:[%s1879_s2] sm:$0xff]   ;;  %v1563_v40 = vld [vmem:[#allocation2 + $0x18] sm:$0xff]   ;;  %v390_v61 = vld [vmem:[#allocation2 + $0xa8] sm:$0x1]  ;;  %vm531_vm4 = vcmask 523264   ;;  %vm598_vm5 = vcmask 261120  }
  0x18   :  { %1425 = vmatprep.subr.bf16.mxu0 %v1666_v0  ;;  %1431 = vmatprep.subr.bf16.mxu1 %v1666_v0  ;;  %v1562_v34 = vld [vmem:[#allocation2 + $0x10] sm:$0xff]   ;;  %v1565_v63 = vld [vmem:[#allocation2 + $0xb8] sm:$0xff]   ;;  %v1566_v1 = vld [vmem:[#allocation2 + $0xc0] sm:$0xff]  }
  0x19   :  { %v1312_v41 = vld [vmem:[%s1882_s5 + $0x2] ss:$0 sm:$0xff]  ;;  %v1315_v51 = vld [vmem:[%s1882_s5 + $0x3] ss:$0 sm:$0xff] }
  0x1a   :  { %1416 = vmatmul.mubr.msk.bf16.vlgmr.msra.gmra.mrb[0].mxu0 %vm55_vm1, %v1559_v4  ;;  %v1564_v62 = vld [vmem:[#allocation2 + $0xb0] sm:$0xff]  }
  0x1b   :  { %1427 = vmatprep.mubr.msk.bf16.mxu0 %vm1667_vm0, %v1666_v0  ;;  %1426 = vmatpush3.bf16.msra.mxu0 %v1560_v12 }
  0x1c   :  { %1437 = vmatprep.subr.bf16.mxu0 %v1666_v0 }
  0xed   :  { %v93_v7 = vpop.f32.mrb[0].mxu0 }
  0xee   :  { %v1417_v8 = vpop.f32.mrb[1].mxu0 }
  0xef   :  { %v96_v9 = vpop.f32.mrb[2].mxu0  ;;  %v1568_v8 = vld [vmem:[#allocation2 + $0xd0] sm:$0xff]  }
  0xf0   :  { %v101_v10 = vpack.c.bf16 %v96_v9, %v93_v7  ;;  %v1418_v11 = vpop.f32.mrb[3].mxu0  ;;  %v1567_v7 = vld [vmem:[#allocation2 + $0xc8] sm:$0xff]   ;;  %v1319_v9 = vld [vmem:[%s1882_s5 + $0x5] ss:$0 sm:$0xff] }
  0xf2   :  { %1422 = vmatmul.mubr.msk.bf16.vlgmr.msra.gmra.mrb[0].mxu1 %vm107_vm3, %v101_v10 }
  0xf3   :  { %1433 = vmatprep.mubr.msk.bf16.mxu1 %vm1667_vm0, %v1666_v0 }
 0x1c5   :  { %v149_v14 = vpop.f32.mrb[0].mxu1 }
 0x1c6   :  { %v150_v15 = vadd.f32 %v1305_v13, %v149_v14  ;;  %v1423_v16 = vpop.f32.mrb[1].mxu1 }
 0x1c7   :  { %v152_v17 = vpop.f32.mrb[2].mxu1 }
 0x1c8   :  { %v153_v18 = vadd.f32 %v1305_v13, %v152_v17  ;;  %v1424_v19 = vpop.f32.mrb[3].mxu1  ;;  %v156_v20 = vmax.f32 %v150_v15, 0.0  ;;  %v1569_v17 = vld [vmem:[#allocation2 + $0xd8] sm:$0xff]  }
 0x1c9   :  { %v1322_v19 = vld [vmem:[%s1882_s5 + $0x6] ss:$0 sm:$0xff] }
 0x1ca   :  { %v157_v21 = vmax.f32 %v153_v18, 0.0  ;;  %v1570_v18 = vld [vmem:[#allocation2 + $0xe0] sm:$0xff]  }
 0x1cc   :  { %v160_v22 = vpack.c.bf16 %v157_v21, %v156_v20 }
 0x1ce   :  { %1428 = vmatmul.mubr.msk.bf16.vlgmr.msra.gmra.mrb[4].mxu0 %vm55_vm1, %v160_v22 }
 0x1cf   :  { %1439 = vmatprep.mubr.msk.bf16.mxu0 %vm1667_vm0, %v1666_v0  ;;  %1438 = vmatpush3.bf16.msra.mxu0 %v1562_v34  ;;  %v1332_v34 = vld [vmem:[%s1882_s5 + $0x4] ss:$0 sm:$0xff] }
 0x1d0   :  { %1449 = vmatprep.subr.bf16.mxu0 %v1666_v0 }
 0x2a1   :  { %v209_v24 = vpop.f32.mrb[4].mxu0 }
 0x2a2   :  { %v210_v25 = vadd.f32 %v1307_v23, %v209_v24  ;;  %v1429_v26 = vpop.f32.mrb[5].mxu0 }
 0x2a3   :  { %v212_v27 = vpop.f32.mrb[6].mxu0  ;;  %v1571_v26 = vld [vmem:[#allocation2 + $0x20] sm:$0xff]  }
 0x2a4   :  { %v213_v28 = vadd.f32 %v1307_v23, %v212_v27  ;;  %v1430_v29 = vpop.f32.mrb[7].mxu0  ;;  %v216_v30 = vmax.f32 %v210_v25, 0.0 }
 0x2a6   :  { %v217_v31 = vmax.f32 %v213_v28, 0.0  ;;  %v1328_v28 = vld [vmem:[%s1882_s5 + $0x7] ss:$0 sm:$0xff] }
 0x2a8   :  { %v220_v32 = vpack.c.bf16 %v217_v31, %v216_v30 }
 0x2aa   :  { %1432 = vmatpush3.bf16.msra.mxu1 %v220_v32 }
 0x2ab   :  { %1443 = vmatprep.subr.bf16.mxu1 %v1666_v0 }
 0x2ad   :  { %1434 = vmatmul.mubr.msk.bf16.vlgmr.msra.gmra.mrb[4].mxu1 %vm55_vm1, %v1561_v33 }
 0x2ae   :  { %1445 = vmatprep.mubr.msk.bf16.mxu1 %vm1667_vm0, %v1666_v0  ;;  %1444 = vmatpush3.bf16.msra.mxu1 %v1563_v40  ;;  %v1572_v40 = vld [vmem:[#allocation2 + $0x60] sm:$0xff]  }
 0x2af   :  { %1455 = vmatprep.subr.bf16.mxu1 %v1666_v0 }
 0x380   :  { %v263_v35 = vpop.f32.mrb[4].mxu1 }
 0x381   :  { %v1435_v36 = vpop.f32.mrb[5].mxu1 }
 0x382   :  { %v266_v37 = vpop.f32.mrb[6].mxu1 }
 0x383   :  { %v272_v38 = vpack.c.bf16 %v266_v37, %v263_v35  ;;  %v1436_v39 = vpop.f32.mrb[7].mxu1 }
 0x385   :  { %1440 = vmatmul.mubr.msk.bf16.vlgmr.msra.gmra.mrb[8].mxu0 %vm55_vm1, %v272_v38 }
 0x386   :  { %1451 = vmatprep.mubr.msk.bf16.mxu0 %vm1667_vm0, %v1666_v0 }
 0x458   :  { %v321_v42 = vpop.f32.mrb[8].mxu0 }
 0x459   :  { %v322_v43 = vadd.f32 %v1312_v41, %v321_v42  ;;  %v1441_v44 = vpop.f32.mrb[9].mxu0  ;;  %v1573_v42 = vld [vmem:[#allocation2 + $0x28] sm:$0xff]  }
 0x45a   :  { %v324_v45 = vpop.f32.mrb[10].mxu0 }
 0x45b   :  { %v325_v46 = vadd.f32 %v1312_v41, %v324_v45  ;;  %v1442_v47 = vpop.f32.mrb[11].mxu0  ;;  %v328_v48 = vmax.f32 %v322_v43, 0.0 }
 0x45c   :  { %v1575_v47 = vld [vmem:[#allocation2 + $0x38] sm:$0xff]  }
 0x45d   :  { %v329_v49 = vmax.f32 %v325_v46, 0.0  ;;  %v1574_v46 = vld [vmem:[#allocation2 + $0x30] sm:$0xff]  }
 0x45f   :  { %v332_v50 = vpack.c.bf16 %v329_v49, %v328_v48  ;;  %v991_v48 = vld [vmem:[%s1883_s6] sm:$0xff]  ;;  %v1668_v49 = vmov 0  }
 0x460   :  { %1557 = vset.pattern.permute.xlu1 %v1668_v49 }
 0x461   :  { %1446 = vmatmul.mubr.msk.bf16.vlgmr.msra.gmra.mrb[8].mxu1 %vm55_vm1, %v332_v50  ;;  %997 = vperm.xlu1 %1557, %v991_v48   ;;  %v993_v50 = vld [vmem:[%s1883_s6 + $0x10] sm:$0xff] }
 0x462   :  { %1457 = vmatprep.mubr.msk.bf16.mxu1 %vm1667_vm0, %v1666_v0  ;;  %1456 = vmatpush3.bf16.msra.mxu1 %v1564_v62 }
 0x463   :  { %1473 = vmatprep.subr.bf16.mxu1 %v1666_v0 }
 0x534   :  { %v381_v52 = vpop.f32.mrb[8].mxu1 }
 0x535   :  { %v382_v53 = vadd.f32 %v1315_v51, %v381_v52  ;;  %v1447_v54 = vpop.f32.mrb[9].mxu1  ;;  %v1578_v52 = vld [vmem:[#allocation2 + $0x68] sm:$0xff]  }
 0x536   :  { %v384_v55 = vpop.f32.mrb[10].mxu1  ;;  %v1579_v54 = vld [vmem:[#allocation2 + $0x70] sm:$0xff]  }
 0x537   :  { %v385_v56 = vadd.f32 %v1315_v51, %v384_v55  ;;  %v1448_v57 = vpop.f32.mrb[11].mxu1  ;;  %v388_v58 = vmax.f32 %v382_v53, 0.0  ;;  %v992_v51 = vld [vmem:[%s1883_s6 + $0x8] sm:$0xff]  ;;  %v994_v53 = vld [vmem:[%s1883_s6 + $0x18] sm:$0xff]  ;;  %v1153_v55 = vld [vmem:[%s1883_s6 + $0x20] sm:$0xff] }
 0x538   :  { %1002 = vperm.xlu1 %1557, %v992_v51   ;;  %v1154_v57 = vld [vmem:[%s1883_s6 + $0x28] sm:$0xff] }
 0x539   :  { %v389_v59 = vmax.f32 %v385_v56, 0.0  ;;  %v1580_v56 = vld [vmem:[#allocation2 + $0x78] sm:$0xff]  }
 0x53b   :  { %v391_v60 = vpack.c.bf16 %v389_v59, %v388_v58  ;;  %v1581_v58 = vld [vmem:[#allocation2 + $0x80] sm:$0xff]  }
 0x53c   :  { %1012 = vperm.xlu1 %1557, %v994_v53   ;;  %v1218_v59 = vld [vmem:[%s1883_s6 + $0x30] sm:$0x1] }
 0x53d   :  { %1450 = vmatpush3.bf16.msra.mxu0 %v391_v60 }
 0x53e   :  { %1461 = vmatprep.subr.bf16.mxu0 %v1666_v0 }
 0x540   :  { %1452 = vmatmul.mubr.msk.bf16.vlgmr.msra.gmra.mrb[12].mxu0 %vm55_vm1, %v390_v61  ;;  %1157 = vperm.xlu1 %1557, %v1153_v55  }
 0x541   :  { %1469 = vmatprep.mubr.msk.bf16.mxu0 %vm1667_vm0, %v1666_v0  ;;  %1462 = vmatpush3.bf16.msra.mxu0 %v1565_v63 }
 0x542   :  { %1463 = vmatprep.subr.bf16.mxu0 %v1666_v0 }
 0x544   :  { %1162 = vperm.xlu1 %1557, %v1154_v57   ;;  %v1216_v57 = vld [vmem:[#allocation2 + $0x50] sm:$0x1] }
 0x545   :  { %1464 = vmatpush3.bf16.msra.mxu0 %v1566_v1 }
 0x546   :  { %1465 = vmatprep.subr.bf16.mxu0 %v1666_v0 }
 0x548   :  { %1221 = vperm.xlu1 %1557, %v1218_v59  }
 0x549   :  { %1466 = vmatpush3.bf16.msra.mxu0 %v1567_v7  ;;  %v1577_v7 = vld [vmem:[#allocation2 + $0x58] sm:$0xff]  }
 0x54a   :  { %1467 = vmatprep.subr.bf16.mxu0 %v1666_v0 }
 0x54d   :  { %1468 = vmatpush3.bf16.msra.mxu0 %v1568_v8 }
 0x613   :  { %v429_v2 = vpop.f32.mrb[12].mxu0 }
 0x614   :  { %v437_v3 = vpack.c.bf16 %v429_v2, %v429_v2  ;;  %v1453_v4 = vpop.f32.mrb[13].mxu0 }
 0x615   :  { %v432_v5 = vpop.f32.mrb[14].mxu0 }
 0x616   :  { %v1454_v6 = vpop.f32.mrb[15].mxu0  ;;  %1458 = vmatmul.mubr.msk.bf16.vlgmr.msra.gmra.mrb[12].mxu1 %vm55_vm1, %v437_v3 }
 0x617   :  { %1477 = vmatprep.mubr.msk.bf16.mxu1 %vm1667_vm0, %v1666_v0  ;;  %1474 = vmatpush3.bf16.msra.mxu1 %v1569_v17 }
 0x618   :  { %1475 = vmatprep.subr.bf16.mxu1 %v1666_v0 }
 0x61b   :  { %1476 = vmatpush3.bf16.msra.mxu1 %v1570_v18 }
 0x61c   :  { %1481 = vmatprep.subr.bf16.mxu1 %v1666_v0 }
 0x6e9   :  { %v486_v10 = vpop.f32.mrb[12].mxu1 }
 0x6ea   :  { %v487_v11 = vadd.f32 %v1319_v9, %v486_v10  ;;  %v1459_v12 = vpop.f32.mrb[13].mxu1  ;;  %v1576_v9 = vld [vmem:[#allocation2 + $0x40] sm:$0xff]  }
 0x6eb   :  { %v489_v13 = vpop.f32.mrb[14].mxu1 }
 0x6ec   :  { %v492_v14 = vmax.f32 %v487_v11, 0.0  ;;  %v1460_v15 = vpop.f32.mrb[15].mxu1  ;;  %v1583_v13 = vld [vmem:[#allocation2 + $0x90] sm:$0xff]  }
 0x6ed   :  { %v1585_v15 = vld [vmem:[#allocation2 + $0xa0] sm:$0xff]  }
 0x6ee   :  { %v501_v16 = vpack.c.bf16 %v492_v14, %v492_v14  ;;  %v1584_v14 = vld [vmem:[#allocation2 + $0x98] sm:$0xff]  }
 0x6f0   :  { %1470 = vmatmul.mubr.msk.bf16.vlgmr.msra.gmra.mrb[16].mxu0 %vm531_vm4, %v501_v16  ;;  %v998_v16 = vpop.permute.xlu1 %997 }
 0x6f1   :  { %1489 = vmatprep.mubr.msk.bf16.mxu0 %vm55_vm1, %v1573_v42 }
 0x6f4   :  { %v1003_v17 = vpop.permute.xlu1 %1002 }
 0x7c3   :  { %v569_v20 = vpop.f32.mrb[16].mxu0 }
 0x7c4   :  { %v570_v21 = vadd.f32 %v1322_v19, %v569_v20  ;;  %v1471_v22 = vpop.f32.mrb[17].mxu0 }
 0x7c5   :  { %v572_v23 = vpop.f32.mrb[18].mxu0  ;;  %v1013_v22 = vpop.permute.xlu1 %1012 }
 0x7c6   :  { %v575_v24 = vmax.f32 %v570_v21, 0.0  ;;  %v1472_v25 = vpop.f32.mrb[19].mxu0 }
 0x7c8   :  { %v580_v27 = vpack.c.bf16 %v575_v24, %v575_v24 }
 0x7ca   :  { %1478 = vmatmul.mubr.msk.bf16.vlgmr.msra.gmra.mrb[16].mxu1 %vm598_vm5, %v580_v27 }
 0x7cb   :  { %1482 = vmatpush3.bf16.msra.mxu1 %v1571_v26  ;;  %1483 = vmatprep.mubr.msk.bf16.mxu1 %vm1667_vm0, %v1666_v0 }
 0x7cc   :  { %1493 = vmatprep.subr.bf16.mxu1 %v1666_v0 }
 0x7d2   :  { %1484 = vmatmul.mubr.msk.bf16.vlgmr.msra.gmra.mrb[20].mxu1 %vm55_vm1, %v391_v60  ;;  %v1582_v60 = vld [vmem:[#allocation2 + $0x88] sm:$0xff]  }
 0x7d3   :  { %1495 = vmatprep.mubr.msk.bf16.mxu1 %vm1667_vm0, %v1666_v0  ;;  %1494 = vmatpush3.bf16.msra.mxu1 %v1572_v40 }
 0x7d4   :  { %1511 = vmatprep.subr.bf16.mxu1 %v1578_v52 }
 0x89d   :  { %v636_v29 = vpop.f32.mrb[16].mxu1 }
 0x89e   :  { %v637_v30 = vadd.f32 %v1328_v28, %v636_v29  ;;  %v1479_v31 = vpop.f32.mrb[17].mxu1  ;;  %v1348_v28 = vld [vmem:[%s1880_s3] ss:$0 sm:$0xff]  ;;  %s1669_s3 = smov [#allocation6]  }
 0x89f   :  { %v639_v32 = vpop.f32.mrb[18].mxu1  ;;  %s1290_s2 = sshll.u32 %s1669_s3, 4  ;;  %s1291_s2 = int_to_ptr.vmem [resolvable:$true] %s1290_s2 }
 0x8a0   :  { %642 = vst [vmem:[#allocation6] sm:$0x3] %v637_v30  ;;  %v1480_v33 = vpop.f32.mrb[19].mxu1  ;;  %s1613_s28 = scalar_lea.vmem %s1291_s2, 32  ;;  %p1618_p9 = scmp.lt.s32.totalorder %s1291_s2, %s1291_s2 }
 0x8a1   :  { %p1614_p8 = scmp.ne.s32.totalorder %s1291_s2, %s1613_s28  ;;  %p1619_p10 = scmp.lt.s32.totalorder %s1613_s28, %s1613_s28 }
 0x8a3   :  { %p1620_p11 = por %p1619_p10, %p1618_p9 }
 0x8a5   :  { %v693_v35 = vpop.f32.mrb[20].mxu1  ;;  %p1621_p12 = pnand %p1620_p11, %p1614_p8 }
 0x8a6   :  { %v1485_v36 = vpop.f32.mrb[21].mxu1  ;;  %v694_v37 = vadd.f32 %v1332_v34, %v693_v35 }
 0x8a7   :  { %v696_v38 = vpop.f32.mrb[22].mxu1 }
 0x8a8   :  { %700 = vxpose.xlu0.b32.start [1/2] (short) (narrow) %v694_v37, 16  ;;  %v1486_v39 = vpop.f32.mrb[23].mxu1  ;;  %v697_v41 = vadd.f32 %v1332_v34, %v696_v38 }
 0x8ac   :  { %701 = vxpose.xlu0.b32.end [2/2] (short) (narrow) %v697_v41, 16 }
 0x8d5   :  { %1558 = vset.pattern.permute.xlu0 %v1668_v49 }
 0x8d6   :  { %1007 = vperm.xlu0 %1558, %v993_v50  }
 0x928   :  { %v716_v43 = vpop.trf.xlu0 }
 0x92c   :  { %v717_v44 = vpop.trf.xlu0 }
 0x92d   :  { %v736_v45 = vpack.c.bf16 %v717_v44, %v716_v43 }
 0x92f   :  { %1487 = vmatprep.subr.bf16.mxu0 %v736_v45  ;;  %1496 = vmatmul.mubr.msk.bf16.vlgmr.msra.gmra.mrb[24].mxu1 %vm55_vm1, %v736_v45 }
 0x930   :  { %1488 = vmatpush3.bf16.msra.mxu0 %v736_v45  ;;  %1512 = vmatpush3.bf16.msra.mxu1 %v1578_v52  ;;  %v1586_v45 = vld [vmem:[#allocation2 + $0x48] sm:$0xff]  }
 0x931   :  { %1513 = vmatprep.subr.bf16.mxu1 %v1579_v54 }
 0x933   :  { %1490 = vmatmul.mubr.msk.bf16.vlgmr.msra.gmra.mrb[20].mxu0 %vm55_vm1, %v1574_v46  ;;  %v1158_v46 = vpop.permute.xlu1 %1157 }
 0x934   :  { %1501 = vmatprep.mubr.msk.bf16.mxu0 %vm55_vm1, %v1575_v47  ;;  %1514 = vmatpush3.bf16.msra.mxu1 %v1579_v54 }
 0x935   :  { %1515 = vmatprep.subr.bf16.mxu1 %v1580_v56 }
 0x937   :  { %v1163_v50 = vpop.permute.xlu1 %1162 }
 0x938   :  { %1516 = vmatpush3.bf16.msra.mxu1 %v1580_v56 }
 0x939   :  { %1517 = vmatprep.subr.bf16.mxu1 %v1581_v58 }
 0x93c   :  { %1518 = vmatpush3.bf16.msra.mxu1 %v1581_v58 }
 0x93d   :  { %1519 = vmatprep.subr.bf16.mxu1 %v1582_v60 }
 0x940   :  { %1520 = vmatpush3.bf16.msra.mxu1 %v1582_v60 }
 0x941   :  { %1521 = vmatprep.subr.bf16.mxu1 %v1583_v13 }
 0x944   :  { %1522 = vmatpush3.bf16.msra.mxu1 %v1583_v13 }
 0x945   :  { %1523 = vmatprep.subr.bf16.mxu1 %v1584_v14 }
 0x948   :  { %1524 = vmatpush3.bf16.msra.mxu1 %v1584_v14 }
 0x949   :  { %1525 = vmatprep.subr.bf16.mxu1 %v1585_v15 }
 0x94c   :  { %1526 = vmatpush3.bf16.msra.mxu1 %v1585_v15 }
 0x955   :  { %v1008_v18 = vpop.permute.xlu0 %1007 }
 0xa02   :  { %v851_v61 = vpop.f32.mrb[24].mxu1 }
 0xa03   :  { %v1497_v62 = vpop.f32.mrb[25].mxu1  ;;  %v858_v1 = vand.u32 2147483647, %v851_v61 }
 0xa04   :  { %v854_v63 = vpop.f32.mrb[26].mxu1 }
 0xa05   :  { %v859_v2 = vand.u32 2147483647, %v854_v63  ;;  %v1498_v3 = vpop.f32.mrb[27].mxu1 }
 0xa06   :  { %v1491_v4 = vpop.f32.mrb[20].mxu0 }
 0xa07   :  { %v864_v5 = vpack.c.bf16 %v859_v2, %v858_v1  ;;  %v787_v6 = vpop.f32.mrb[21].mxu0 }
 0xa08   :  { %v1492_v8 = vpop.f32.mrb[22].mxu0 }
 0xa09   :  { %1499 = vmatprep.subr.bf16.mxu0 %v864_v5  ;;  %v805_v10 = vpack.c.bf16 %v1492_v8, %v1491_v4  ;;  %v790_v11 = vpop.f32.mrb[23].mxu0 }
 0xa0a   :  { %1500 = vmatpush3.bf16.msra.mxu0 %v864_v5  ;;  %v804_v12 = vpack.c.bf16 %v790_v11, %v787_v6 }
 0xa0b   :  { %1505 = vmatprep.subr.bf16.mxu0 %v1577_v7 }
 0xa0d   :  { %1502 = vmatmul.mubr.msk.bf16.vlgmr.msra.gmra.mrb[24].mxu0 %vm55_vm1, %v1576_v9 }
 0xa0e   :  { %1506 = vmatpush3.bf16.msra.mxu0 %v1577_v7  ;;  %1507 = vmatprep.mubr.msk.bf16.mxu0 %vm55_vm1, %v804_v12 }
 0xa0f   :  { %1531 = vmatprep.subr.bf16.mxu0 %v1666_v0 }
 0xa19   :  { %1508 = vmatmul.mubr.msk.bf16.vlgmr.msra.gmra.mrb[24].mxu0 %vm55_vm1, %v805_v10 }
 0xa1a   :  { %1535 = vmatprep.mubr.msk.bf16.mxu0 %vm1667_vm0, %v1666_v0 }
 0xaec   :  { %v1509_v19 = vpop.f32.mrb[24].mxu0 }
 0xaed   :  { %v1017_v20 = vadd.f32 %v1509_v19, %v1008_v18  ;;  %v976_v21 = vpop.f32.mrb[25].mxu0 }
 0xaee   :  { %v1015_v23 = vadd.f32 %v998_v16, %v976_v21  ;;  %v1510_v24 = vpop.f32.mrb[26].mxu0 }
 0xaef   :  { %v1021_v25 = vmax.f32 %v1017_v20, 0.0  ;;  %v1018_v26 = vadd.f32 %v1510_v24, %v1013_v22  ;;  %v979_v27 = vpop.f32.mrb[27].mxu0 }
 0xaf0   :  { %v1019_v29 = vmax.f32 %v1015_v23, 0.0  ;;  %v1016_v30 = vadd.f32 %v1003_v17, %v979_v27 }
 0xaf1   :  { %v1022_v31 = vmax.f32 %v1018_v26, 0.0  ;;  %v1032_v33 = vmul.f32 %v1348_v28, %v1021_v25 }
 0xaf2   :  { %v1020_v32 = vmax.f32 %v1016_v30, 0.0  ;;  %v1030_v35 = vmul.f32 %v1348_v28, %v1019_v29 }
 0xaf3   :  { %v1033_v34 = vmul.f32 %v1348_v28, %v1022_v31 }
 0xaf4   :  { %v1031_v36 = vmul.f32 %v1348_v28, %v1020_v32 }
 0xaf5   :  { %v1051_v37 = vpack.c.bf16 %v1033_v34, %v1032_v33 }
 0xaf6   :  { %v1050_v38 = vpack.c.bf16 %v1031_v36, %v1030_v35 }
 0xaf8   :  { %1527 = vmatprep.mubr.bf16.mxu1 %v1050_v38 }
 0xaf9   :  { %1528 = vmatmul.mubr.bf16.vlgmr.msra.gmra.mrb[28].mxu1 %v1051_v37 }
 0xbcc   :  { %v1529_v39 = vpop.f32.mrb[28].mxu1 }
 0xbcd   :  { %v1134_v40 = vpop.f32.mrb[29].mxu1 }
 0xbce   :  { %v1530_v41 = vpop.f32.mrb[30].mxu1 }
 0xbcf   :  { %v1152_v42 = vpack.c.bf16 %v1530_v41, %v1529_v39  ;;  %v1137_v43 = vpop.f32.mrb[31].mxu1 }
 0xbd0   :  { %v1151_v44 = vpack.c.bf16 %v1137_v43, %v1134_v40 }
 0xbd2   :  { %1532 = vmatpush3.bf16.msra.mxu0 %v1151_v44 }
 0xbd3   :  { %1533 = vmatprep.subr.bf16.mxu0 %v1666_v0 }
 0xbd6   :  { %1534 = vmatpush3.bf16.msra.mxu0 %v1152_v42 }
 0xbd7   :  { %1539 = vmatprep.subr.bf16.mxu0 %v1666_v0 }
 0xbd9   :  { %1536 = vmatmul.mubr.msk.bf16.vlgmr.msra.gmra.mrb[28].mxu0 %vm598_vm5, %v1586_v45 }
 0xbda   :  { %1541 = vmatprep.mubr.msk.bf16.mxu0 %vm1667_vm0, %v1666_v0 }
 0xcac   :  { %v1207_v47 = vpop.f32.mrb[28].mxu0 }
 0xcad   :  { %v1208_v48 = vadd.f32 %v1207_v47, %v1158_v46  ;;  %v1537_v49 = vpop.f32.mrb[29].mxu0 }
 0xcae   :  { %v1210_v51 = vpop.f32.mrb[30].mxu0 }
 0xcaf   :  { %v1211_v52 = vadd.f32 %v1210_v51, %v1163_v50  ;;  %v1538_v53 = vpop.f32.mrb[31].mxu0  ;;  %v1214_v54 = vmax.f32 %v1208_v48, 0.0 }
 0xcb1   :  { %v1215_v55 = vmax.f32 %v1211_v52, 0.0 }
 0xcb3   :  { %v1217_v56 = vpack.c.bf16 %v1215_v55, %v1214_v54 }
 0xcb5   :  { %1540 = vmatpush3.bf16.msra.mxu0 %v1217_v56 }
 0xcb8   :  { %1542 = vmatmul.mubr.msk.bf16.vlgmr.msra.gmra.mrb[32].mxu0 %vm55_vm1, %v1216_v57 }
 0xcb9   :  { %1624 = shalt.err (!%p1621_p12)
}
 0xcba   :  { %s1625_s9 = scalar_lea.hbm %s1885_s8, 32 }
 0xcbb   :  { %p1626_p13 = scmp.ne.s32.totalorder %s1885_s8, %s1625_s9  ;;  %p1629_p0 = scmp.lt.u32.totalorder %s1625_s9, %s1885_s8 }
 0xcbd   :  { %p1631_p1 = pnand %p1629_p0, %p1626_p13 }
 0xcbf   :  { %1634 = shalt.err (!%p1631_p1)
}
 0xcc0   :  { %1293 = dma.vmem_to_hbm [thread:$0]  %s1291_s2, 32, %s1885_s8, [#allocation7]   ;;  %v1222_v0 = vpop.permute.xlu1 %1221 }
 0xcc1   :  { %s1670_s16 = smov [#allocation5]  }
 0xcc2   :  { %s1280_s5 = sshll.u32 %s1670_s16, 4  ;;  %s1281_s5 = int_to_ptr.vmem [resolvable:$true] %s1280_s5 }
 0xcc3   :  { %s1635_s17 = scalar_lea.vmem %s1281_s5, 16  ;;  %s1639_s18 = scalar_lea.vmem %s1281_s5, 32 }
 0xcc4   :  { %p1636_p2 = scmp.ne.s32.totalorder %s1281_s5, %s1635_s17  ;;  %p1640_p3 = scmp.lt.s32.totalorder %s1281_s5, %s1281_s5 }
 0xcc5   :  { %p1641_p4 = scmp.lt.s32.totalorder %s1639_s18, %s1635_s17 }
 0xcc7   :  { %p1642_p5 = por %p1641_p4, %p1640_p3 }
 0xcc9   :  { %p1643_p6 = pnand %p1642_p5, %p1636_p2 }
 0xd8b   :  { %v1261_v58 = vpop.f32.mrb[32].mxu0 }
 0xd8c   :  { %v1262_v59 = vadd.f32 %v1261_v58, %v1222_v0  ;;  %v1543_v60 = vpop.f32.mrb[33].mxu0 }
 0xd8d   :  { %v1264_v61 = vpop.f32.mrb[34].mxu0 }
 0xd8e   :  { %v1360_v62 = vmul.f32 -1.442695, %v1262_v59  ;;  %v1544_v63 = vpop.f32.mrb[35].mxu0 }
 0xd90   :  { %1587 = vpow2.f32 %v1360_v62 }
 0xd9a   :  { %v1588_v1 = vpop.eup %1587 }
 0xd9b   :  { %v1270_v2 = vadd.f32 1.0, %v1588_v1 }
 0xd9d   :  { %1589 = vrcp.f32 %v1270_v2 }
 0xda7   :  { %v1590_v3 = vpop.eup %1589 }
 0xda8   :  { %1273 = vst [vmem:[#allocation5] sm:$0x1] %v1590_v3 }
 0xda9   :  { %1646 = shalt.err (!%p1643_p6)
}
 0xdaa   :  { %s1647_s20 = scalar_lea.hbm %s1884_s7, 16 }
 0xdab   :  { %p1648_p7 = scmp.ne.s32.totalorder %s1884_s7, %s1647_s20  ;;  %p1651_p8 = scmp.lt.u32.totalorder %s1647_s20, %s1884_s7 }
 0xdad   :  { %p1653_p9 = pnand %p1651_p8, %p1648_p7 }
 0xdaf   :  { %1656 = shalt.err (!%p1653_p9)
}
 0xdb0   :  { %1283 = dma.vmem_to_hbm [thread:$0]  %s1281_s5, 16, %s1884_s7, [#allocation4]  }
 0xdb1   :  { %1659 = dma.done.wait [#allocation4], 16  }
 0xdb2   :  { %1660 = vsyncadd [#allocation4], 4294967280 }
 0xdb3   :  { %1661 = dma.done.wait [#allocation7], 32  }
 0xdb4   :  { %1662 = vsyncadd [#allocation7], 4294967264 }
 0xdb5   :  { %1300 = vsyncpa [#allocation3], 1 }
 0xdb6   :  { %1301 = vsyncpa [#allocation4], 1 }
 0xdb7   :  { %1302 = vsyncpa [#allocation7], 1 }

</bundles_post_ra>
